<compile_context>
chip_gen: v7x
topology: tpu7x:2x2x1
jax: 0.10.0
libtpu: 0.0.40
codegen_flags: <defaults>
</compile_context>

<pallas_src>
import functools

import jax
import jax.numpy as jnp
import numpy as np
from jax.experimental import pallas as pl
from jax.experimental.pallas import tpu as pltpu  # noqa: F401  (TPU backend assumed)

# ---- configuration (mirrors the module-level globals, non-degenerate sizes) ----
QUERY_DIM = 32          # "query_dim"
VALUE_DIM = 32          # "value_dim"
NUM_HEAD = 1            # "num_head"
DROPOUT_P = 1.0         # "dropout" (p=1 -> F.dropout zeroes everything)
BATCH = 2
SEQ = 3 * QUERY_DIM     # forward only type-checks when S == 3 * query_dim


def _fused_kernel(x_ref, wqkvt_ref, bqkv_ref, wlin_ref, blin_ref, outt_ref, *,
                  batch, seq, d):
    """Single kernel step over the whole batch (everything resident in VMEM).

    x_ref     (B*S, D)   bf16  flattened activations
    wqkvt_ref (D, 3D)    bf16  pre-transposed qkv weight
    bqkv_ref  (1, 3D)    f32
    wlin_ref  (V, D)     f32   final Linear weight (original layout)
    blin_ref  (V, 1)     f32   final Linear bias as a column
    outt_ref  (B, V, 3D) f32   transposed output; wrapper swaps the last two axes
    """
    # qkv projection for every (batch, seq) row in one MXU pass, f32 accumulate.
    v1 = jnp.dot(x_ref[...], wqkvt_ref[...],
                 preferred_element_type=jnp.float32) + bqkv_ref[...]      # (B*S, 3D)

    # dropout(p=1) zeroes qk, so softmax is exactly uniform (1/D): every row of the
    # attention output equals the column-mean of v, and the final Linear collapses
    # to outer(mean_v, row_sums(W_lin)) + b_lin.  Exact constant fold for p == 1.
    # TODO(synk): p < 1 would need pltpu.prng_seed/prng_random_bits and the full
    # qk/scale/softmax path; this kernel hard-codes the p=1 semantics of the spec.
    wsum = jnp.sum(wlin_ref[...], axis=1, keepdims=True) * (1.0 / d)      # (V, 1)
    blin = blin_ref[...]                                                  # (V, 1)

    for b in range(batch):  # static unroll, batch is tiny
        v_rows = v1[b * seq + 2 * d: b * seq + 3 * d, :]                  # (D, 3D)
        colsum = jnp.sum(v_rows, axis=0, keepdims=True)                   # (1, 3D)
        # out^T[b, j, i] = (row_sum(W_lin)[j] / D) * colsum[i] + b_lin[j]
        outt_ref[b] = (wsum * colsum + blin).astype(outt_ref.dtype)       # (V, 3D)


@jax.jit
def model_forward(x, w_qkv, b_qkv, w_lin, b_lin):
    B, S, D = x.shape
    assert S == 3 * D, "forward is only shape-consistent when seq == 3 * query_dim"
    assert DROPOUT_P == 1.0, "in-kernel constant fold is exact only for dropout p=1"
    V = w_lin.shape[0]

    # Layout plumbing outside the kernel: flatten batch for one projection matmul,
    # pre-transpose W_qkv (kernel never transposes), bf16 MXU operands.
    x_flat = x.reshape(B * S, D).astype(jnp.bfloat16)
    wqkv_t = jnp.transpose(w_qkv).astype(jnp.bfloat16)            # (D, 3D)
    bqkv_row = b_qkv.reshape(1, 3 * D).astype(jnp.float32)
    blin_col = b_lin.reshape(V, 1).astype(jnp.float32)

    kernel = functools.partial(_fused_kernel, batch=B, seq=S, d=D)
    outt = pl.pallas_call(
        kernel,
        out_shape=jax.ShapeDtypeStruct((B, V, 3 * D), jnp.float32),
    )(x_flat, wqkv_t, bqkv_row, w_lin.astype(jnp.float32), blin_col)

    # back to the PyTorch output layout (B, 3D, V)
    return jnp.transpose(outt, (0, 2, 1))


def reference_forward(x, w_qkv, b_qkv, w_lin, b_lin):
    """Pure-JAX mirror of the PyTorch forward (dropout p=1 -> zeros).

    Uses the same bf16 inputs for the qkv projection as the kernel (f32 accumulate)
    so the comparison is like-for-like; remaining f32 matmuls run at HIGHEST precision.
    """
    D = x.shape[-1]
    hp = jax.lax.Precision.HIGHEST
    xb = x.astype(jnp.bfloat16)
    wb = w_qkv.astype(jnp.bfloat16)
    v1 = jnp.einsum("bsd,od->bso", xb, wb,
                    preferred_element_type=jnp.float32) + b_qkv.reshape(1, 1, -1)
    q, k, v = v1[:, :D], v1[:, D:2 * D], v1[:, 2 * D:]
    qk = jnp.einsum("bqe,bke->bqk", q, k, precision=hp) * jax.lax.rsqrt(jnp.float32(D))
    qk = qk * 0.0                                     # F.dropout(p=1, training=True)
    sm = jax.nn.softmax(qk, axis=-1)
    out = jnp.einsum("bqk,bke->bqe", sm, v, precision=hp)
    out_t = jnp.transpose(out, (0, 2, 1))
    return jnp.einsum("bsd,vd->bsv", out_t, w_lin, precision=hp) + b_lin.reshape(1, 1, -1)


if __name__ == "__main__":
    key = jax.random.PRNGKey(0)
    k_x, k_w1, k_b1, k_w2, k_b2 = jax.random.split(key, 5)

    # deterministic parameter init (PyTorch-Linear-style uniform bounds)
    bound1 = 1.0 / np.sqrt(QUERY_DIM)
    w_qkv = jax.random.uniform(k_w1, (3 * QUERY_DIM, QUERY_DIM),
                               jnp.float32, -bound1, bound1)
    b_qkv = jax.random.uniform(k_b1, (1, 3 * QUERY_DIM),
                               jnp.float32, -bound1, bound1)
    bound2 = 1.0 / np.sqrt(QUERY_DIM * NUM_HEAD)
    w_lin = jax.random.uniform(k_w2, (VALUE_DIM, QUERY_DIM * NUM_HEAD),
                               jnp.float32, -bound2, bound2)
    b_lin = jax.random.uniform(k_b2, (1, VALUE_DIM),
                               jnp.float32, -bound2, bound2)

    x1 = jax.random.normal(k_x, (BATCH, SEQ, QUERY_DIM), jnp.float32)

    out = model_forward(x1, w_qkv, b_qkv, w_lin, b_lin)
    out = jax.block_until_ready(out)

    ref = reference_forward(x1, w_qkv, b_qkv, w_lin, b_lin)
    np.testing.assert_allclose(np.asarray(out), np.asarray(ref),
                               rtol=1e-4, atol=1e-4)

    print("KERNEL_OK")
</pallas_src>

<mosaic_0001>
module attributes {stable_mosaic.version = 11 : i64} {
  func.func @_fused_kernel(%arg0: memref<192x32xbf16, #tpu.memory_space<vmem>>, %arg1: memref<32x96xbf16, #tpu.memory_space<vmem>>, %arg2: memref<1x96xf32, #tpu.memory_space<vmem>>, %arg3: memref<32x32xf32, #tpu.memory_space<vmem>>, %arg4: memref<32x1xf32, #tpu.memory_space<vmem>>, %arg5: memref<2x32x96xf32, #tpu.memory_space<vmem>>) attributes {dimension_semantics = [], scalar_prefetch = 0 : i64, scratch_operands = 0 : i64, tpu.core_type = #tpu.core_type<tc>} {
    %c0 = arith.constant 0 : index
    %c0_0 = arith.constant 0 : index
    %0 = vector.load %arg0[%c0, %c0_0] : memref<192x32xbf16, #tpu.memory_space<vmem>>, vector<192x32xbf16>
    %c0_1 = arith.constant 0 : index
    %c0_2 = arith.constant 0 : index
    %1 = vector.load %arg1[%c0_1, %c0_2] : memref<32x96xbf16, #tpu.memory_space<vmem>>, vector<32x96xbf16>
    %cst = arith.constant dense<0.000000e+00> : vector<192x96xf32>
    %2 = tpu.matmul %0, %1, %cst {dimension_numbers = #tpu.dot_dimension_numbers<[1], [0], [0], [1], [0, 0, 1, 1], [], []>} : vector<192x32xbf16>, vector<32x96xbf16>, vector<192x96xf32> -> vector<192x96xf32>
    %c0_3 = arith.constant 0 : index
    %c0_4 = arith.constant 0 : index
    %3 = vector.load %arg2[%c0_3, %c0_4] : memref<1x96xf32, #tpu.memory_space<vmem>>, vector<1x96xf32>
    %4 = vector.broadcast %3 : vector<1x96xf32> to vector<192x96xf32>
    %5 = arith.addf %2, %4 : vector<192x96xf32>
    %c0_5 = arith.constant 0 : index
    %c0_6 = arith.constant 0 : index
    %6 = vector.load %arg3[%c0_5, %c0_6] : memref<32x32xf32, #tpu.memory_space<vmem>>, vector<32x32xf32>
    %cst_7 = arith.constant dense<0.000000e+00> : vector<32xf32>
    %7 = vector.multi_reduction <add>, %6, %cst_7 [1] : vector<32x32xf32> to vector<32xf32>
    %8 = vector.shape_cast %7 : vector<32xf32> to vector<32x1xf32>
    %cst_8 = arith.constant 3.125000e-02 : f32
    %9 = vector.broadcast %cst_8 : f32 to vector<32x1xf32>
    %10 = arith.mulf %8, %9 : vector<32x1xf32>
    %c0_9 = arith.constant 0 : index
    %c0_10 = arith.constant 0 : index
    %11 = vector.load %arg4[%c0_9, %c0_10] : memref<32x1xf32, #tpu.memory_space<vmem>>, vector<32x1xf32>
    %12 = vector.extract_strided_slice %5 {offsets = [64, 0], sizes = [32, 96], strides = [1, 1]} : vector<192x96xf32> to vector<32x96xf32>
    %cst_11 = arith.constant dense<0.000000e+00> : vector<96xf32>
    %13 = vector.multi_reduction <add>, %12, %cst_11 [0] : vector<32x96xf32> to vector<96xf32>
    %14 = vector.shape_cast %13 : vector<96xf32> to vector<1x96xf32>
    %15 = vector.broadcast %10 : vector<32x1xf32> to vector<32x96xf32>
    %16 = vector.broadcast %14 : vector<1x96xf32> to vector<32x96xf32>
    %17 = arith.mulf %15, %16 : vector<32x96xf32>
    %18 = vector.broadcast %11 : vector<32x1xf32> to vector<32x96xf32>
    %19 = arith.addf %17, %18 : vector<32x96xf32>
    %c0_12 = arith.constant 0 : index
    %c0_13 = arith.constant 0 : index
    %c0_14 = arith.constant 0 : index
    %20 = vector.load %arg5[%c0_12, %c0_13, %c0_14] : memref<2x32x96xf32, #tpu.memory_space<vmem>>, vector<1x32x96xf32>
    %21 = vector.shape_cast %20 : vector<1x32x96xf32> to vector<32x96xf32>
    %22 = vector.shape_cast %19 : vector<32x96xf32> to vector<1x32x96xf32>
    tpu.vector_store %arg5[%c0_12, %c0_13, %c0_14], %22 {strides = array<i32>} : memref<2x32x96xf32, #tpu.memory_space<vmem>>, vector<1x32x96xf32>,
    %23 = vector.extract_strided_slice %5 {offsets = [160, 0], sizes = [32, 96], strides = [1, 1]} : vector<192x96xf32> to vector<32x96xf32>
    %cst_15 = arith.constant dense<0.000000e+00> : vector<96xf32>
    %24 = vector.multi_reduction <add>, %23, %cst_15 [0] : vector<32x96xf32> to vector<96xf32>
    %25 = vector.shape_cast %24 : vector<96xf32> to vector<1x96xf32>
    %26 = vector.broadcast %10 : vector<32x1xf32> to vector<32x96xf32>
    %27 = vector.broadcast %25 : vector<1x96xf32> to vector<32x96xf32>
    %28 = arith.mulf %26, %27 : vector<32x96xf32>
    %29 = vector.broadcast %11 : vector<32x1xf32> to vector<32x96xf32>
    %30 = arith.addf %28, %29 : vector<32x96xf32>
    %c1 = arith.constant 1 : index
    %c0_16 = arith.constant 0 : index
    %c0_17 = arith.constant 0 : index
    %31 = vector.load %arg5[%c1, %c0_16, %c0_17] : memref<2x32x96xf32, #tpu.memory_space<vmem>>, vector<1x32x96xf32>
    %32 = vector.shape_cast %31 : vector<1x32x96xf32> to vector<32x96xf32>
    %33 = vector.shape_cast %30 : vector<32x96xf32> to vector<1x32x96xf32>
    tpu.vector_store %arg5[%c1, %c0_16, %c0_17], %33 {strides = array<i32>} : memref<2x32x96xf32, #tpu.memory_space<vmem>>, vector<1x32x96xf32>,
    return
  }
}

</mosaic_0001>

<bundles_post_ra>
// kernel: model_forward.1
= control target key start
LH: loop header
LB: loop body
LE: loop exit
PB: predicated region body
PF: predicated region fallthrough
CT: control target
= control target key end

     0   :  { %vm129_vm0 = vcmask 261120   ;;  %v508_v7 = vmov 0   ;;  %s662_s0 = inlined_call_operand.vmem [shape: bf16[192,32], index: 0, kind: input, shape index: {}]   ;;  %s663_s1 = inlined_call_operand.vmem [shape: bf16[32,96], index: 1, kind: input, shape index: {}]   ;;  %s664_s2 = inlined_call_operand.vmem [shape: f32[1,96], index: 2, kind: input, shape index: {}]   ;;  %s665_s3 = inlined_call_operand.vmem [shape: f32[32,32], index: 3, kind: input, shape index: {}]   ;;  %s666_s4 = inlined_call_operand.vmem [shape: f32[32,1], index: 4, kind: input, shape index: {}]   ;;  %s667_s5 = inlined_call_operand.hbm [shape: f32[2,32,96], index: 5, kind: output, shape index: {}]  }
   0x1   :  { %v470_v0 = vld [vmem:[%s663_s1] sm:$0xff]   ;;  %v471_v1 = vld [vmem:[%s663_s1 + $0x8] sm:$0xff]   ;;  %v473_v3 = vld [vmem:[%s662_s0 + $0x30] sm:$0xff]   ;;  %469 = vset.pattern.permute.xlu1 %v508_v7  ;;  %468 = vset.pattern.permute.xlu0 %v508_v7 }
   0x2   :  { %432 = vmatprep.subr.bf16.mxu0 %v470_v0  ;;  %460 = vmatprep.subr.bf16.mxu1 %v470_v0  ;;  %v472_v2 = vld [vmem:[%s662_s0] sm:$0xff]   ;;  %v474_v4 = vld [vmem:[%s662_s0 + $0x8] sm:$0xff]   ;;  %v475_v5 = vld [vmem:[%s662_s0 + $0x38] sm:$0xff]  }
   0x3   :  { %433 = vmatpush3.bf16.msra.mxu0 %v470_v0  ;;  %462 = vmatpush3.bf16.msra.mxu1 %v470_v0  ;;  %v476_v6 = vld [vmem:[%s662_s0 + $0x10] sm:$0xff]   ;;  %v477_v8 = vld [vmem:[%s662_s0 + $0x40] sm:$0xff]   ;;  %v478_v9 = vld [vmem:[%s662_s0 + $0x18] sm:$0xff]  }
   0x4   :  { %434 = vmatprep.subr.bf16.mxu0 %v471_v1  ;;  %461 = vmatprep.subr.bf16.mxu1 %v471_v1  ;;  %v479_v10 = vld [vmem:[%s662_s0 + $0x48] sm:$0xff]   ;;  %v281_v11 = vld [vmem:[%s665_s3 + $0x10] sm:$0xff]  ;;  %v282_v12 = vld [vmem:[%s665_s3 + $0x18] sm:$0xff] }
   0x5   :  { %436 = vmatprep.mubr.msk.bf16.mxu0 %vm129_vm0, %v472_v2  ;;  %448 = vmatprep.mubr.msk.bf16.mxu1 %vm129_vm0, %v473_v3  ;;  %v279_v13 = vld [vmem:[%s665_s3] sm:$0xff]  ;;  %v481_v15 = vld [vmem:[%s662_s0 + $0x50] sm:$0xff]   ;;  %v289_v16 = vsel %vm129_vm0, %v281_v11, 0.0  ;;  %v280_v18 = vld [vmem:[%s665_s3 + $0x8] sm:$0xff] }
   0x6   :  { %v480_v14 = vld [vmem:[%s662_s0 + $0x20] sm:$0xff]   ;;  %v283_v17 = vsel %vm129_vm0, %v279_v13, 0.0  ;;  %290 = vadd.xlane.f32.xlu1 %v289_v16 }
   0x7   :  { %435 = vmatpush3.bf16.msra.mxu0 %v471_v1  ;;  %463 = vmatpush3.bf16.msra.mxu1 %v471_v1 }
   0x8   :  { %284 = vadd.xlane.f32.xlu0 %v283_v17 }
   0xa   :  { %437 = vmatmul.mubr.msk.bf16.vlgmr.msra.gmra.mrb[0].mxu0 %vm129_vm0, %v474_v4  ;;  %449 = vmatmul.mubr.msk.bf16.vlgmr.msra.gmra.mrb[0].mxu1 %vm129_vm0, %v475_v5 }
   0xb   :  { %440 = vmatprep.mubr.msk.bf16.mxu0 %vm129_vm0, %v476_v6  ;;  %452 = vmatprep.mubr.msk.bf16.mxu1 %vm129_vm0, %v477_v8 }
   0xc   :  { %10 = vsyncpa [#allocation3], 0  ;;  %v292_v19 = vsel %vm129_vm0, %v282_v12, 0.0  ;;  %v286_v20 = vsel %vm129_vm0, %v280_v18, 0.0  ;;  %v482_v21 = vld [vmem:[%s662_s0 + $0x28] sm:$0xff]   ;;  %v483_v22 = vld [vmem:[%s662_s0 + $0x58] sm:$0xff]  }
   0xd   :  { %293 = vadd.xlane.f32.xlu1 %v292_v19  ;;  %287 = vadd.xlane.f32.xlu0 %v286_v20  ;;  %v300_v23 = vld [vmem:[%s666_s4 + $0x8] sm:$0xff]  ;;  %v301_v24 = vld [vmem:[%s666_s4 + $0x10] sm:$0xff]  ;;  %v299_v25 = vld [vmem:[%s666_s4] sm:$0xff]  ;;  %vm303_vm1 = vcmask 785408  }
   0xe   :  { %v302_v26 = vld [vmem:[%s666_s4 + $0x18] sm:$0xff]  ;;  %v391_v43 = vld [vmem:[%s664_s2] ss:$0 sm:$0xff]  ;;  %s509_s2 = smov [#allocation2]  }
   0xf   :  { %s380_s9 = sshll.u32 %s509_s2, 4  ;;  %s635_s9 = int_to_ptr.vmem [resolvable:$true] %s380_s9 }
  0x10   :  { %s484_s10 = scalar_lea.vmem %s635_s9, 1024  ;;  %p489_p1 = scmp.lt.s32.totalorder %s635_s9, %s635_s9 }
  0x11   :  { %p485_p0 = scmp.ne.s32.totalorder %s635_s9, %s484_s10  ;;  %p490_p2 = scmp.lt.s32.totalorder %s484_s10, %s484_s10 }
  0x12   :  { %441 = vmatmul.mubr.msk.bf16.gmra.mrb[4].mxu0 %vm129_vm0, %v478_v9  ;;  %453 = vmatmul.mubr.msk.bf16.gmra.mrb[4].mxu1 %vm129_vm0, %v479_v10 }
  0x13   :  { %444 = vmatprep.mubr.msk.bf16.mxu0 %vm129_vm0, %v480_v14  ;;  %456 = vmatprep.mubr.msk.bf16.mxu1 %vm129_vm0, %v481_v15  ;;  %p491_p3 = por %p490_p2, %p489_p1 }
  0x15   :  { %p492_p4 = pnand %p491_p3, %p485_p0 }
  0x1a   :  { %445 = vmatmul.mubr.msk.bf16.gmra.mrb[8].mxu0 %vm129_vm0, %v482_v21  ;;  %457 = vmatmul.mubr.msk.bf16.gmra.mrb[8].mxu1 %vm129_vm0, %v483_v22 }
  0x1e   :  { %328 = vperm.xlu1 %469, %v300_v23  }
  0x22   :  { %333 = vperm.xlu1 %469, %v301_v24  }
  0x23   :  { %323 = vperm.xlu0 %468, %v299_v25  }
  0x26   :  { %338 = vperm.xlu1 %469, %v302_v26  }
  0x93   :  { %v291_v44 = vpop.xlane.xlu1 %290 }
  0x94   :  { %v297_v26 = vmul.f32 0.03125, %v291_v44 }
  0x95   :  { %v285_v17 = vpop.xlane.xlu0 %284 }
  0x9a   :  { %v294_v5 = vpop.xlane.xlu1 %293  ;;  %v288_v25 = vpop.xlane.xlu0 %287 }
  0x9e   :  { %v329_v14 = vpop.permute.xlu1 %328 }
  0xa2   :  { %v334_v22 = vpop.permute.xlu1 %333 }
  0xdd   :  { %v438_v27 = vpop.f32.mrb[0].mxu0  ;;  %v450_v28 = vpop.f32.mrb[0].mxu1 }
  0xde   :  { %v200_v29 = vpop.f32.mrb[1].mxu0  ;;  %v240_v30 = vpop.f32.mrb[1].mxu1  ;;  %v298_v27 = vmul.f32 0.03125, %v294_v5 }
  0xdf   :  { %v439_v31 = vpop.f32.mrb[2].mxu0  ;;  %v451_v32 = vpop.f32.mrb[2].mxu1  ;;  %v295_v30 = vmul.f32 0.03125, %v285_v17 }
  0xe0   :  { %v202_v33 = vpop.f32.mrb[3].mxu0  ;;  %v242_v34 = vpop.f32.mrb[3].mxu1  ;;  %v296_v31 = vmul.f32 0.03125, %v288_v25 }
  0xe5   :  { %v442_v35 = vpop.f32.mrb[4].mxu0  ;;  %v454_v36 = vpop.f32.mrb[4].mxu1 }
  0xe6   :  { %v212_v37 = vpop.f32.mrb[5].mxu0  ;;  %v252_v38 = vpop.f32.mrb[5].mxu1 }
  0xe7   :  { %v443_v39 = vpop.f32.mrb[6].mxu0  ;;  %v455_v40 = vpop.f32.mrb[6].mxu1 }
  0xe8   :  { %v214_v41 = vpop.f32.mrb[7].mxu0  ;;  %v254_v42 = vpop.f32.mrb[7].mxu1 }
  0xe9   :  { %v324_v36 = vpop.permute.xlu0 %323  ;;  %v339_v37 = vpop.permute.xlu1 %338 }
  0xed   :  { %v446_v45 = vpop.f32.mrb[8].mxu0  ;;  %v458_v46 = vpop.f32.mrb[8].mxu1 }
  0xee   :  { %v224_v47 = vpop.f32.mrb[9].mxu0  ;;  %v264_v48 = vpop.f32.mrb[9].mxu1  ;;  %v233_v55 = vadd.f32 %v446_v45, %v391_v43  ;;  %v273_v56 = vadd.f32 %v458_v46, %v391_v43 }
  0xef   :  { %v225_v49 = vadd.f32 %v391_v43, %v224_v47  ;;  %v265_v50 = vadd.f32 %v391_v43, %v264_v48  ;;  %v447_v51 = vpop.f32.mrb[10].mxu0  ;;  %v459_v52 = vpop.f32.mrb[10].mxu1 }
  0xf0   :  { %v227_v53 = vpop.f32.mrb[11].mxu0  ;;  %v267_v54 = vpop.f32.mrb[11].mxu1  ;;  %v236_v59 = vadd.f32 %v447_v51, %v391_v43  ;;  %v276_v60 = vadd.f32 %v459_v52, %v391_v43  ;;  %v307_v3 = vsel %vm303_vm1, %v233_v55, 0.0  ;;  %v352_v4 = vsel %vm303_vm1, %v273_v56, 0.0 }
  0xf1   :  { %v228_v57 = vadd.f32 %v391_v43, %v227_v53  ;;  %v268_v58 = vadd.f32 %v391_v43, %v267_v54  ;;  %v304_v61 = vsel %vm303_vm1, %v225_v49, 0.0  ;;  %v349_v62 = vsel %vm303_vm1, %v265_v50, 0.0 }
  0xf2   :  { %v309_v8 = vsel %vm303_vm1, %v236_v59, 0.0  ;;  %v354_v9 = vsel %vm303_vm1, %v276_v60, 0.0 }
  0xf3   :  { %v305_v63 = vsel %vm303_vm1, %v228_v57, 0.0  ;;  %v350_v0 = vsel %vm303_vm1, %v268_v58, 0.0 }
  0xf4   :  { %v306_v1 = vadd.f32 %v305_v63, %v304_v61  ;;  %v351_v2 = vadd.f32 %v350_v0, %v349_v62 }
  0xf6   :  { %v308_v6 = vadd.f32 %v307_v3, %v306_v1  ;;  %v353_v7 = vadd.f32 %v352_v4, %v351_v2 }
  0xf8   :  { %v310_v10 = vadd.f32 %v309_v8, %v308_v6  ;;  %v355_v11 = vadd.f32 %v354_v9, %v353_v7 }
  0xfa   :  { %v311_v12 = vrot.slane %v310_v10, 4  ;;  %v356_v13 = vrot.slane %v355_v11, 4 }
  0xfc   :  { %v312_v15 = vadd.f32 %v311_v12, %v310_v10  ;;  %v357_v16 = vadd.f32 %v356_v13, %v355_v11 }
  0xfe   :  { %v313_v18 = vrot.slane %v312_v15, 2  ;;  %v358_v19 = vrot.slane %v357_v16, 2 }
 0x100   :  { %v314_v20 = vadd.f32 %v313_v18, %v312_v15  ;;  %v359_v21 = vadd.f32 %v358_v19, %v357_v16 }
 0x102   :  { %v315_v23 = vrot.slane %v314_v20, 1  ;;  %v360_v24 = vrot.slane %v359_v21, 1 }
 0x104   :  { %v316_v28 = vadd.f32 %v315_v23, %v314_v20  ;;  %v361_v29 = vadd.f32 %v360_v24, %v359_v21 }
 0x106   :  { %v319_v32 = vmul.f32 %v316_v28, %v297_v26  ;;  %v364_v33 = vmul.f32 %v361_v29, %v297_v26  ;;  %v320_v34 = vmul.f32 %v316_v28, %v298_v27  ;;  %v365_v35 = vmul.f32 %v361_v29, %v298_v27 }
 0x107   :  { %v318_v38 = vmul.f32 %v316_v28, %v296_v31  ;;  %v363_v39 = vmul.f32 %v361_v29, %v296_v31  ;;  %v317_v40 = vmul.f32 %v316_v28, %v295_v30  ;;  %v362_v41 = vmul.f32 %v361_v29, %v295_v30 }
 0x108   :  { %v343_v42 = vadd.f32 %v334_v22, %v319_v32  ;;  %v368_v43 = vadd.f32 %v364_v33, %v334_v22  ;;  %v344_v44 = vadd.f32 %v339_v37, %v320_v34  ;;  %v369_v45 = vadd.f32 %v365_v35, %v339_v37 }
 0x109   :  { %v342_v46 = vadd.f32 %v329_v14, %v318_v38  ;;  %v367_v47 = vadd.f32 %v363_v39, %v329_v14  ;;  %v341_v48 = vadd.f32 %v324_v36, %v317_v40  ;;  %v366_v49 = vadd.f32 %v362_v41, %v324_v36 }
 0x10a   :  { %347 = vst.msk [vmem:[#allocation2 + $0x10] sm:$0xff] %vm303_vm1, %v343_v42  ;;  %373 = vst.msk [vmem:[#allocation2 + $0x30] sm:$0xff] %vm303_vm1, %v368_v43 }
 0x10b   :  { %348 = vst.msk [vmem:[#allocation2 + $0x18] sm:$0xff] %vm303_vm1, %v344_v44  ;;  %374 = vst.msk [vmem:[#allocation2 + $0x38] sm:$0xff] %vm303_vm1, %v369_v45 }
 0x10c   :  { %346 = vst.msk [vmem:[#allocation2 + $0x8] sm:$0xff] %vm303_vm1, %v342_v46  ;;  %372 = vst.msk [vmem:[#allocation2 + $0x28] sm:$0xff] %vm303_vm1, %v367_v47 }
 0x10d   :  { %345 = vst.msk [vmem:[#allocation2] sm:$0xff] %vm303_vm1, %v341_v48  ;;  %371 = vst.msk [vmem:[#allocation2 + $0x20] sm:$0xff] %vm303_vm1, %v366_v49 }
 0x10e   :  { %495 = shalt.err (!%p492_p4)
}
 0x10f   :  { %s496_s13 = scalar_lea.hbm %s667_s5, 1024 }
 0x110   :  { %p497_p5 = scmp.ne.s32.totalorder %s667_s5, %s496_s13  ;;  %p500_p6 = scmp.lt.u32.totalorder %s496_s13, %s667_s5 }
 0x112   :  { %p502_p7 = pnand %p500_p6, %p497_p5 }
 0x114   :  { %505 = shalt.err (!%p502_p7)
}
 0x115   :  { %s510_s18 = smov 128   ;;  %s511_s19 = smov 8  }
 0x116   :  { %386 = dma.vmem_to_hbm [thread:$0]  %s635_s9, 1024, %s667_s5, [#allocation3], %s510_s18, %s510_s18, %s511_s19  }
 0x117   :  { %506 = dma.done.wait [#allocation3], 1024  }
 0x118   :  { %507 = vsyncadd [#allocation3], 4294966272 }
 0x119   :  { %390 = vsyncpa [#allocation3], 1 }

</bundles_post_ra>
